<compile_context>
chip_gen: v7x
topology: tpu7x:2x2x1
jax: 0.10.0
libtpu: 0.0.40
codegen_flags: <defaults>
</compile_context>

<pallas_src>
import jax
import jax.numpy as jnp
from jax.experimental import pallas as pl
from jax.experimental.pallas import tpu as pltpu


# ----------------------------------------------------------------------------
# Packed parameter slab layout: each param starts on an 8-sublane boundary,
# lane 0, inside one (80, 128) f32 slab (40 KiB, trivially VMEM-resident).
# ----------------------------------------------------------------------------
_W1_R, _B1_R = 0, 8      # w1 (4, 4),  b1 (1, 4)
_W2_R, _B2_R = 16, 24    # w2 folded (4, 18), b2 (1, 18)
_W3_R, _B3_R = 32, 56    # w3 (18, 2) spans rows 32..49, b3 (1, 2)
_W4_R, _B4_R = 64, 72    # w4 (2, 6),  b4 (1, 6)
_SLAB_ROWS, _SLAB_LANES = 80, 128


def _affine_vpu(x, w, b):
    """y = x @ w + b for tiny K/N as broadcast-FMAs on the VPU.

    x: (B, K), w: (K, N), b: (1, N)  ->  (B, N).
    All four layers are far below one MXU tile, so the VPU formulation avoids
    the serial MXU push / result-FIFO-pop latency of back-to-back jnp.dot's.
    The terms (bias included) are combined with a tree reduction so there is
    no K-deep serial accumulation chain on the VPU.
    """
    K = w.shape[0]
    terms = [b] + [x[:, k:k + 1] * w[k:k + 1, :] for k in range(K)]
    while len(terms) > 1:
        nxt = [terms[i] + terms[i + 1] for i in range(0, len(terms) - 1, 2)]
        if len(terms) % 2:
            nxt.append(terms[-1])
        terms = nxt
    return terms[0]


def _row_pool2(h):
    """Sliding window-2 max over rows, full-shape (last row is wrap garbage,
    sliced off only at the final store).  Rides the otherwise-idle XLU slot."""
    B = h.shape[0]
    return jnp.maximum(h, pltpu.roll(h, shift=B - 1, axis=0))


def _mlp_kernel(x_ref, p_ref, o_ref):
    x = x_ref[...]                                   # (B, 4)
    B = x.shape[0]

    # Zero-cost static views into the packed parameter slab.
    w1 = p_ref[_W1_R:_W1_R + 4, 0:4]
    b1 = p_ref[_B1_R:_B1_R + 1, 0:4]
    w2 = p_ref[_W2_R:_W2_R + 4, 0:18]                # cat/ReLU-folded weight
    b2 = p_ref[_B2_R:_B2_R + 1, 0:18]
    w3 = p_ref[_W3_R:_W3_R + 18, 0:2]
    b3 = p_ref[_B3_R:_B3_R + 1, 0:2]
    w4 = p_ref[_W4_R:_W4_R + 2, 0:6]
    b4 = p_ref[_B4_R:_B4_R + 1, 0:6]

    # layers1 + relu
    h = jnp.maximum(_affine_vpu(x, w1, b1), 0.0)     # (B, 4)

    # cat((h, h), 1); relu; cat((h,)*6, 1); relu; layers2; relu
    # -> both cats and the two redundant ReLUs (h >= 0) are folded into w2.
    h = jnp.maximum(_affine_vpu(h, w2, b2), 0.0)     # (B, 18)

    # layers3
    h = _affine_vpu(h, w3, b3)                       # (B, 2)

    # max_pool2d(kernel_size=2, stride=1) -> window-2 max over rows
    h = _row_pool2(h)                                # (B, 2); row B-1 garbage

    # layers4 (row-wise affine: garbage row stays isolated)
    h = _affine_vpu(h, w4, b4)                       # (B, 6)

    # second max_pool2d -> window-2 max over rows; only the final store slices.
    h = _row_pool2(h)                                # (B, 6); rows 0..B-3 valid
    o_ref[...] = h[0:B - 2, :]                       # (B-2, 6)


def prepare_params(params):
    """One-time: fold the cats/ReLUs into layers2 and pack all params into a
    single lane-aligned VMEM slab.  Exact because the activation feeding the
    cats is post-ReLU (>= 0); if that ReLU ever changes, the fold is invalid.
    """
    w2_folded = params["w2"].reshape(12, 4, 18).sum(axis=0)     # (4, 18)
    slab = jnp.zeros((_SLAB_ROWS, _SLAB_LANES), jnp.float32)
    slab = slab.at[_W1_R:_W1_R + 4, 0:4].set(params["w1"])
    slab = slab.at[_B1_R:_B1_R + 1, 0:4].set(params["b1"])
    slab = slab.at[_W2_R:_W2_R + 4, 0:18].set(w2_folded)
    slab = slab.at[_B2_R:_B2_R + 1, 0:18].set(params["b2"])
    slab = slab.at[_W3_R:_W3_R + 18, 0:2].set(params["w3"])
    slab = slab.at[_B3_R:_B3_R + 1, 0:2].set(params["b3"])
    slab = slab.at[_W4_R:_W4_R + 2, 0:6].set(params["w4"])
    slab = slab.at[_B4_R:_B4_R + 1, 0:6].set(params["b4"])
    return slab


def model_forward(x, param_slab):
    B = x.shape[0]
    if B < 3:
        raise ValueError(
            f"model_forward needs at least 3 rows (the two row-pools each "
            f"shrink the batch by 1); got B={B}")

    out_shape = jax.ShapeDtypeStruct((B - 2, 6), jnp.float32)

    # Advisory: this call is tiny -- let XLA schedule it as cheap.
    flops = 2 * B * (4 * 4 + 4 * 18 + 18 * 2 + 2 * 6)
    bytes_accessed = (x.size + param_slab.size + (B - 2) * 6) * 4
    cost = pl.CostEstimate(flops=flops, transcendentals=0,
                           bytes_accessed=bytes_accessed)

    # Grid-less call: everything stays resident in VMEM as full-array blocks;
    # exactly two input DMAs (x + packed slab) and one output writeback.
    vmem = pl.BlockSpec(memory_space=pltpu.MemorySpace.VMEM)
    return pl.pallas_call(
        _mlp_kernel,
        out_shape=out_shape,
        in_specs=[vmem, vmem],
        out_specs=vmem,
        cost_estimate=cost,
    )(x, param_slab)


def init_params(key):
    ks = jax.random.split(key, 8)

    def lin(kw, kb, fin, fout):
        w = jax.random.normal(kw, (fin, fout), jnp.float32) / jnp.sqrt(float(fin))
        b = 0.01 * jax.random.normal(kb, (1, fout), jnp.float32)
        return w, b

    w1, b1 = lin(ks[0], ks[1], 4, 4)
    w2, b2 = lin(ks[2], ks[3], 48, 18)   # repaired in_features (see header note)
    w3, b3 = lin(ks[4], ks[5], 18, 2)
    w4, b4 = lin(ks[6], ks[7], 2, 6)
    return dict(w1=w1, b1=b1, w2=w2, b2=b2, w3=w3, b3=b3, w4=w4, b4=b4)


def _reference(x, p):
    """Plain-JAX reference of the same (repaired) pipeline, UN-folded.

    Keeps the explicit concats / redundant ReLUs / dense matmuls so it also
    validates that the w2 fold, the slab packing, the VPU-FMA formulation and
    the roll-based pooling are exact.
    """
    h = jnp.maximum(x @ p["w1"] + p["b1"], 0.0)
    h = jnp.maximum(jnp.concatenate([h, h], axis=1), 0.0)
    h = jnp.maximum(jnp.concatenate([h] * 6, axis=1), 0.0)
    h = jnp.maximum(h @ p["w2"] + p["b2"], 0.0)
    h = h @ p["w3"] + p["b3"]
    h = jnp.maximum(h[:-1], h[1:])
    h = h @ p["w4"] + p["b4"]
    return jnp.maximum(h[:-1], h[1:])


if __name__ == "__main__":
    key = jax.random.PRNGKey(0)
    kx, kp = jax.random.split(key)

    B = 8  # small batch; both row-pools still leave a non-empty output
    x = jax.random.normal(kx, (B, 4), jnp.float32)
    params = init_params(kp)

    # One-time prepare step (fold + pack), outside the per-call hot path.
    param_slab = jax.block_until_ready(prepare_params(params))

    out = model_forward(x, param_slab)
    out = jax.block_until_ready(out)

    ref = _reference(x, params)
    assert out.shape == (B - 2, 6), out.shape
    assert jnp.allclose(out, ref, atol=1e-4, rtol=1e-4), "mismatch vs reference"

    print("KERNEL_OK")
</pallas_src>

<mosaic_0001>
module attributes {stable_mosaic.version = 11 : i64} {
  func.func @_mlp_kernel(%arg0: memref<8x4xf32, #tpu.memory_space<vmem>>, %arg1: memref<80x128xf32, #tpu.memory_space<vmem>>, %arg2: memref<6x6xf32, #tpu.memory_space<vmem>>) attributes {dimension_semantics = [], scalar_prefetch = 0 : i64, scratch_operands = 0 : i64, tpu.core_type = #tpu.core_type<tc>} {
    %c0 = arith.constant 0 : index
    %c0_0 = arith.constant 0 : index
    %0 = vector.load %arg0[%c0, %c0_0] : memref<8x4xf32, #tpu.memory_space<vmem>>, vector<8x4xf32>
    %c0_1 = arith.constant 0 : index
    %c0_2 = arith.constant 0 : index
    %1 = vector.load %arg1[%c0_1, %c0_2] : memref<80x128xf32, #tpu.memory_space<vmem>>, vector<4x4xf32>
    %c8 = arith.constant 8 : index
    %c0_3 = arith.constant 0 : index
    %2 = vector.load %arg1[%c8, %c0_3] : memref<80x128xf32, #tpu.memory_space<vmem>>, vector<1x4xf32>
    %c16 = arith.constant 16 : index
    %c0_4 = arith.constant 0 : index
    %3 = vector.load %arg1[%c16, %c0_4] : memref<80x128xf32, #tpu.memory_space<vmem>>, vector<4x18xf32>
    %c24 = arith.constant 24 : index
    %c0_5 = arith.constant 0 : index
    %4 = vector.load %arg1[%c24, %c0_5] : memref<80x128xf32, #tpu.memory_space<vmem>>, vector<1x18xf32>
    %c32 = arith.constant 32 : index
    %c0_6 = arith.constant 0 : index
    %5 = vector.load %arg1[%c32, %c0_6] : memref<80x128xf32, #tpu.memory_space<vmem>>, vector<18x2xf32>
    %c56 = arith.constant 56 : index
    %c0_7 = arith.constant 0 : index
    %6 = vector.load %arg1[%c56, %c0_7] : memref<80x128xf32, #tpu.memory_space<vmem>>, vector<1x2xf32>
    %c64 = arith.constant 64 : index
    %c0_8 = arith.constant 0 : index
    %7 = vector.load %arg1[%c64, %c0_8] : memref<80x128xf32, #tpu.memory_space<vmem>>, vector<2x6xf32>
    %c72 = arith.constant 72 : index
    %c0_9 = arith.constant 0 : index
    %8 = vector.load %arg1[%c72, %c0_9] : memref<80x128xf32, #tpu.memory_space<vmem>>, vector<1x6xf32>
    %9 = vector.extract_strided_slice %0 {offsets = [0, 0], sizes = [8, 1], strides = [1, 1]} : vector<8x4xf32> to vector<8x1xf32>
    %10 = vector.extract_strided_slice %1 {offsets = [0, 0], sizes = [1, 4], strides = [1, 1]} : vector<4x4xf32> to vector<1x4xf32>
    %11 = vector.broadcast %9 : vector<8x1xf32> to vector<8x4xf32>
    %12 = vector.broadcast %10 : vector<1x4xf32> to vector<8x4xf32>
    %13 = arith.mulf %11, %12 : vector<8x4xf32>
    %14 = vector.extract_strided_slice %0 {offsets = [0, 1], sizes = [8, 1], strides = [1, 1]} : vector<8x4xf32> to vector<8x1xf32>
    %15 = vector.extract_strided_slice %1 {offsets = [1, 0], sizes = [1, 4], strides = [1, 1]} : vector<4x4xf32> to vector<1x4xf32>
    %16 = vector.broadcast %14 : vector<8x1xf32> to vector<8x4xf32>
    %17 = vector.broadcast %15 : vector<1x4xf32> to vector<8x4xf32>
    %18 = arith.mulf %16, %17 : vector<8x4xf32>
    %19 = vector.extract_strided_slice %0 {offsets = [0, 2], sizes = [8, 1], strides = [1, 1]} : vector<8x4xf32> to vector<8x1xf32>
    %20 = vector.extract_strided_slice %1 {offsets = [2, 0], sizes = [1, 4], strides = [1, 1]} : vector<4x4xf32> to vector<1x4xf32>
    %21 = vector.broadcast %19 : vector<8x1xf32> to vector<8x4xf32>
    %22 = vector.broadcast %20 : vector<1x4xf32> to vector<8x4xf32>
    %23 = arith.mulf %21, %22 : vector<8x4xf32>
    %24 = vector.extract_strided_slice %0 {offsets = [0, 3], sizes = [8, 1], strides = [1, 1]} : vector<8x4xf32> to vector<8x1xf32>
    %25 = vector.extract_strided_slice %1 {offsets = [3, 0], sizes = [1, 4], strides = [1, 1]} : vector<4x4xf32> to vector<1x4xf32>
    %26 = vector.broadcast %24 : vector<8x1xf32> to vector<8x4xf32>
    %27 = vector.broadcast %25 : vector<1x4xf32> to vector<8x4xf32>
    %28 = arith.mulf %26, %27 : vector<8x4xf32>
    %29 = vector.broadcast %2 : vector<1x4xf32> to vector<8x4xf32>
    %30 = arith.addf %29, %13 : vector<8x4xf32>
    %31 = arith.addf %18, %23 : vector<8x4xf32>
    %32 = arith.addf %30, %31 : vector<8x4xf32>
    %33 = arith.addf %32, %28 : vector<8x4xf32>
    %cst = arith.constant 0.000000e+00 : f32
    %34 = vector.broadcast %cst : f32 to vector<8x4xf32>
    %35 = arith.maximumf %33, %34 : vector<8x4xf32>
    %36 = vector.extract_strided_slice %35 {offsets = [0, 0], sizes = [8, 1], strides = [1, 1]} : vector<8x4xf32> to vector<8x1xf32>
    %37 = vector.extract_strided_slice %3 {offsets = [0, 0], sizes = [1, 18], strides = [1, 1]} : vector<4x18xf32> to vector<1x18xf32>
    %38 = vector.broadcast %36 : vector<8x1xf32> to vector<8x18xf32>
    %39 = vector.broadcast %37 : vector<1x18xf32> to vector<8x18xf32>
    %40 = arith.mulf %38, %39 : vector<8x18xf32>
    %41 = vector.extract_strided_slice %35 {offsets = [0, 1], sizes = [8, 1], strides = [1, 1]} : vector<8x4xf32> to vector<8x1xf32>
    %42 = vector.extract_strided_slice %3 {offsets = [1, 0], sizes = [1, 18], strides = [1, 1]} : vector<4x18xf32> to vector<1x18xf32>
    %43 = vector.broadcast %41 : vector<8x1xf32> to vector<8x18xf32>
    %44 = vector.broadcast %42 : vector<1x18xf32> to vector<8x18xf32>
    %45 = arith.mulf %43, %44 : vector<8x18xf32>
    %46 = vector.extract_strided_slice %35 {offsets = [0, 2], sizes = [8, 1], strides = [1, 1]} : vector<8x4xf32> to vector<8x1xf32>
    %47 = vector.extract_strided_slice %3 {offsets = [2, 0], sizes = [1, 18], strides = [1, 1]} : vector<4x18xf32> to vector<1x18xf32>
    %48 = vector.broadcast %46 : vector<8x1xf32> to vector<8x18xf32>
    %49 = vector.broadcast %47 : vector<1x18xf32> to vector<8x18xf32>
    %50 = arith.mulf %48, %49 : vector<8x18xf32>
    %51 = vector.extract_strided_slice %35 {offsets = [0, 3], sizes = [8, 1], strides = [1, 1]} : vector<8x4xf32> to vector<8x1xf32>
    %52 = vector.extract_strided_slice %3 {offsets = [3, 0], sizes = [1, 18], strides = [1, 1]} : vector<4x18xf32> to vector<1x18xf32>
    %53 = vector.broadcast %51 : vector<8x1xf32> to vector<8x18xf32>
    %54 = vector.broadcast %52 : vector<1x18xf32> to vector<8x18xf32>
    %55 = arith.mulf %53, %54 : vector<8x18xf32>
    %56 = vector.broadcast %4 : vector<1x18xf32> to vector<8x18xf32>
    %57 = arith.addf %56, %40 : vector<8x18xf32>
    %58 = arith.addf %45, %50 : vector<8x18xf32>
    %59 = arith.addf %57, %58 : vector<8x18xf32>
    %60 = arith.addf %59, %55 : vector<8x18xf32>
    %cst_10 = arith.constant 0.000000e+00 : f32
    %61 = vector.broadcast %cst_10 : f32 to vector<8x18xf32>
    %62 = arith.maximumf %60, %61 : vector<8x18xf32>
    %63 = vector.extract_strided_slice %62 {offsets = [0, 0], sizes = [8, 1], strides = [1, 1]} : vector<8x18xf32> to vector<8x1xf32>
    %64 = vector.extract_strided_slice %5 {offsets = [0, 0], sizes = [1, 2], strides = [1, 1]} : vector<18x2xf32> to vector<1x2xf32>
    %65 = vector.broadcast %63 : vector<8x1xf32> to vector<8x2xf32>
    %66 = vector.broadcast %64 : vector<1x2xf32> to vector<8x2xf32>
    %67 = arith.mulf %65, %66 : vector<8x2xf32>
    %68 = vector.extract_strided_slice %62 {offsets = [0, 1], sizes = [8, 1], strides = [1, 1]} : vector<8x18xf32> to vector<8x1xf32>
    %69 = vector.extract_strided_slice %5 {offsets = [1, 0], sizes = [1, 2], strides = [1, 1]} : vector<18x2xf32> to vector<1x2xf32>
    %70 = vector.broadcast %68 : vector<8x1xf32> to vector<8x2xf32>
    %71 = vector.broadcast %69 : vector<1x2xf32> to vector<8x2xf32>
    %72 = arith.mulf %70, %71 : vector<8x2xf32>
    %73 = vector.extract_strided_slice %62 {offsets = [0, 2], sizes = [8, 1], strides = [1, 1]} : vector<8x18xf32> to vector<8x1xf32>
    %74 = vector.extract_strided_slice %5 {offsets = [2, 0], sizes = [1, 2], strides = [1, 1]} : vector<18x2xf32> to vector<1x2xf32>
    %75 = vector.broadcast %73 : vector<8x1xf32> to vector<8x2xf32>
    %76 = vector.broadcast %74 : vector<1x2xf32> to vector<8x2xf32>
    %77 = arith.mulf %75, %76 : vector<8x2xf32>
    %78 = vector.extract_strided_slice %62 {offsets = [0, 3], sizes = [8, 1], strides = [1, 1]} : vector<8x18xf32> to vector<8x1xf32>
    %79 = vector.extract_strided_slice %5 {offsets = [3, 0], sizes = [1, 2], strides = [1, 1]} : vector<18x2xf32> to vector<1x2xf32>
    %80 = vector.broadcast %78 : vector<8x1xf32> to vector<8x2xf32>
    %81 = vector.broadcast %79 : vector<1x2xf32> to vector<8x2xf32>
    %82 = arith.mulf %80, %81 : vector<8x2xf32>
    %83 = vector.extract_strided_slice %62 {offsets = [0, 4], sizes = [8, 1], strides = [1, 1]} : vector<8x18xf32> to vector<8x1xf32>
    %84 = vector.extract_strided_slice %5 {offsets = [4, 0], sizes = [1, 2], strides = [1, 1]} : vector<18x2xf32> to vector<1x2xf32>
    %85 = vector.broadcast %83 : vector<8x1xf32> to vector<8x2xf32>
    %86 = vector.broadcast %84 : vector<1x2xf32> to vector<8x2xf32>
    %87 = arith.mulf %85, %86 : vector<8x2xf32>
    %88 = vector.extract_strided_slice %62 {offsets = [0, 5], sizes = [8, 1], strides = [1, 1]} : vector<8x18xf32> to vector<8x1xf32>
    %89 = vector.extract_strided_slice %5 {offsets = [5, 0], sizes = [1, 2], strides = [1, 1]} : vector<18x2xf32> to vector<1x2xf32>
    %90 = vector.broadcast %88 : vector<8x1xf32> to vector<8x2xf32>
    %91 = vector.broadcast %89 : vector<1x2xf32> to vector<8x2xf32>
    %92 = arith.mulf %90, %91 : vector<8x2xf32>
    %93 = vector.extract_strided_slice %62 {offsets = [0, 6], sizes = [8, 1], strides = [1, 1]} : vector<8x18xf32> to vector<8x1xf32>
    %94 = vector.extract_strided_slice %5 {offsets = [6, 0], sizes = [1, 2], strides = [1, 1]} : vector<18x2xf32> to vector<1x2xf32>
    %95 = vector.broadcast %93 : vector<8x1xf32> to vector<8x2xf32>
    %96 = vector.broadcast %94 : vector<1x2xf32> to vector<8x2xf32>
    %97 = arith.mulf %95, %96 : vector<8x2xf32>
    %98 = vector.extract_strided_slice %62 {offsets = [0, 7], sizes = [8, 1], strides = [1, 1]} : vector<8x18xf32> to vector<8x1xf32>
    %99 = vector.extract_strided_slice %5 {offsets = [7, 0], sizes = [1, 2], strides = [1, 1]} : vector<18x2xf32> to vector<1x2xf32>
    %100 = vector.broadcast %98 : vector<8x1xf32> to vector<8x2xf32>
    %101 = vector.broadcast %99 : vector<1x2xf32> to vector<8x2xf32>
    %102 = arith.mulf %100, %101 : vector<8x2xf32>
    %103 = vector.extract_strided_slice %62 {offsets = [0, 8], sizes = [8, 1], strides = [1, 1]} : vector<8x18xf32> to vector<8x1xf32>
    %104 = vector.extract_strided_slice %5 {offsets = [8, 0], sizes = [1, 2], strides = [1, 1]} : vector<18x2xf32> to vector<1x2xf32>
    %105 = vector.broadcast %103 : vector<8x1xf32> to vector<8x2xf32>
    %106 = vector.broadcast %104 : vector<1x2xf32> to vector<8x2xf32>
    %107 = arith.mulf %105, %106 : vector<8x2xf32>
    %108 = vector.extract_strided_slice %62 {offsets = [0, 9], sizes = [8, 1], strides = [1, 1]} : vector<8x18xf32> to vector<8x1xf32>
    %109 = vector.extract_strided_slice %5 {offsets = [9, 0], sizes = [1, 2], strides = [1, 1]} : vector<18x2xf32> to vector<1x2xf32>
    %110 = vector.broadcast %108 : vector<8x1xf32> to vector<8x2xf32>
    %111 = vector.broadcast %109 : vector<1x2xf32> to vector<8x2xf32>
    %112 = arith.mulf %110, %111 : vector<8x2xf32>
    %113 = vector.extract_strided_slice %62 {offsets = [0, 10], sizes = [8, 1], strides = [1, 1]} : vector<8x18xf32> to vector<8x1xf32>
    %114 = vector.extract_strided_slice %5 {offsets = [10, 0], sizes = [1, 2], strides = [1, 1]} : vector<18x2xf32> to vector<1x2xf32>
    %115 = vector.broadcast %113 : vector<8x1xf32> to vector<8x2xf32>
    %116 = vector.broadcast %114 : vector<1x2xf32> to vector<8x2xf32>
    %117 = arith.mulf %115, %116 : vector<8x2xf32>
    %118 = vector.extract_strided_slice %62 {offsets = [0, 11], sizes = [8, 1], strides = [1, 1]} : vector<8x18xf32> to vector<8x1xf32>
    %119 = vector.extract_strided_slice %5 {offsets = [11, 0], sizes = [1, 2], strides = [1, 1]} : vector<18x2xf32> to vector<1x2xf32>
    %120 = vector.broadcast %118 : vector<8x1xf32> to vector<8x2xf32>
    %121 = vector.broadcast %119 : vector<1x2xf32> to vector<8x2xf32>
    %122 = arith.mulf %120, %121 : vector<8x2xf32>
    %123 = vector.extract_strided_slice %62 {offsets = [0, 12], sizes = [8, 1], strides = [1, 1]} : vector<8x18xf32> to vector<8x1xf32>
    %124 = vector.extract_strided_slice %5 {offsets = [12, 0], sizes = [1, 2], strides = [1, 1]} : vector<18x2xf32> to vector<1x2xf32>
    %125 = vector.broadcast %123 : vector<8x1xf32> to vector<8x2xf32>
    %126 = vector.broadcast %124 : vector<1x2xf32> to vector<8x2xf32>
    %127 = arith.mulf %125, %126 : vector<8x2xf32>
    %128 = vector.extract_strided_slice %62 {offsets = [0, 13], sizes = [8, 1], strides = [1, 1]} : vector<8x18xf32> to vector<8x1xf32>
    %129 = vector.extract_strided_slice %5 {offsets = [13, 0], sizes = [1, 2], strides = [1, 1]} : vector<18x2xf32> to vector<1x2xf32>
    %130 = vector.broadcast %128 : vector<8x1xf32> to vector<8x2xf32>
    %131 = vector.broadcast %129 : vector<1x2xf32> to vector<8x2xf32>
    %132 = arith.mulf %130, %131 : vector<8x2xf32>
    %133 = vector.extract_strided_slice %62 {offsets = [0, 14], sizes = [8, 1], strides = [1, 1]} : vector<8x18xf32> to vector<8x1xf32>
    %134 = vector.extract_strided_slice %5 {offsets = [14, 0], sizes = [1, 2], strides = [1, 1]} : vector<18x2xf32> to vector<1x2xf32>
    %135 = vector.broadcast %133 : vector<8x1xf32> to vector<8x2xf32>
    %136 = vector.broadcast %134 : vector<1x2xf32> to vector<8x2xf32>
    %137 = arith.mulf %135, %136 : vector<8x2xf32>
    %138 = vector.extract_strided_slice %62 {offsets = [0, 15], sizes = [8, 1], strides = [1, 1]} : vector<8x18xf32> to vector<8x1xf32>
    %139 = vector.extract_strided_slice %5 {offsets = [15, 0], sizes = [1, 2], strides = [1, 1]} : vector<18x2xf32> to vector<1x2xf32>
    %140 = vector.broadcast %138 : vector<8x1xf32> to vector<8x2xf32>
    %141 = vector.broadcast %139 : vector<1x2xf32> to vector<8x2xf32>
    %142 = arith.mulf %140, %141 : vector<8x2xf32>
    %143 = vector.extract_strided_slice %62 {offsets = [0, 16], sizes = [8, 1], strides = [1, 1]} : vector<8x18xf32> to vector<8x1xf32>
    %144 = vector.extract_strided_slice %5 {offsets = [16, 0], sizes = [1, 2], strides = [1, 1]} : vector<18x2xf32> to vector<1x2xf32>
    %145 = vector.broadcast %143 : vector<8x1xf32> to vector<8x2xf32>
    %146 = vector.broadcast %144 : vector<1x2xf32> to vector<8x2xf32>
    %147 = arith.mulf %145, %146 : vector<8x2xf32>
    %148 = vector.extract_strided_slice %62 {offsets = [0, 17], sizes = [8, 1], strides = [1, 1]} : vector<8x18xf32> to vector<8x1xf32>
    %149 = vector.extract_strided_slice %5 {offsets = [17, 0], sizes = [1, 2], strides = [1, 1]} : vector<18x2xf32> to vector<1x2xf32>
    %150 = vector.broadcast %148 : vector<8x1xf32> to vector<8x2xf32>
    %151 = vector.broadcast %149 : vector<1x2xf32> to vector<8x2xf32>
    %152 = arith.mulf %150, %151 : vector<8x2xf32>
    %153 = vector.broadcast %6 : vector<1x2xf32> to vector<8x2xf32>
    %154 = arith.addf %153, %67 : vector<8x2xf32>
    %155 = arith.addf %72, %77 : vector<8x2xf32>
    %156 = arith.addf %82, %87 : vector<8x2xf32>
    %157 = arith.addf %92, %97 : vector<8x2xf32>
    %158 = arith.addf %102, %107 : vector<8x2xf32>
    %159 = arith.addf %112, %117 : vector<8x2xf32>
    %160 = arith.addf %122, %127 : vector<8x2xf32>
    %161 = arith.addf %132, %137 : vector<8x2xf32>
    %162 = arith.addf %142, %147 : vector<8x2xf32>
    %163 = arith.addf %154, %155 : vector<8x2xf32>
    %164 = arith.addf %156, %157 : vector<8x2xf32>
    %165 = arith.addf %158, %159 : vector<8x2xf32>
    %166 = arith.addf %160, %161 : vector<8x2xf32>
    %167 = arith.addf %162, %152 : vector<8x2xf32>
    %168 = arith.addf %163, %164 : vector<8x2xf32>
    %169 = arith.addf %165, %166 : vector<8x2xf32>
    %170 = arith.addf %168, %169 : vector<8x2xf32>
    %171 = arith.addf %170, %167 : vector<8x2xf32>
    %c7_i32 = arith.constant 7 : i32
    %172 = tpu.dynamic_rotate %171 by %c7_i32 dim 0 : vector<8x2xf32>, i32 -> vector<8x2xf32>
    %173 = arith.maximumf %171, %172 : vector<8x2xf32>
    %174 = vector.extract_strided_slice %173 {offsets = [0, 0], sizes = [8, 1], strides = [1, 1]} : vector<8x2xf32> to vector<8x1xf32>
    %175 = vector.extract_strided_slice %7 {offsets = [0, 0], sizes = [1, 6], strides = [1, 1]} : vector<2x6xf32> to vector<1x6xf32>
    %176 = vector.broadcast %174 : vector<8x1xf32> to vector<8x6xf32>
    %177 = vector.broadcast %175 : vector<1x6xf32> to vector<8x6xf32>
    %178 = arith.mulf %176, %177 : vector<8x6xf32>
    %179 = vector.extract_strided_slice %173 {offsets = [0, 1], sizes = [8, 1], strides = [1, 1]} : vector<8x2xf32> to vector<8x1xf32>
    %180 = vector.extract_strided_slice %7 {offsets = [1, 0], sizes = [1, 6], strides = [1, 1]} : vector<2x6xf32> to vector<1x6xf32>
    %181 = vector.broadcast %179 : vector<8x1xf32> to vector<8x6xf32>
    %182 = vector.broadcast %180 : vector<1x6xf32> to vector<8x6xf32>
    %183 = arith.mulf %181, %182 : vector<8x6xf32>
    %184 = vector.broadcast %8 : vector<1x6xf32> to vector<8x6xf32>
    %185 = arith.addf %184, %178 : vector<8x6xf32>
    %186 = arith.addf %185, %183 : vector<8x6xf32>
    %c7_i32_11 = arith.constant 7 : i32
    %187 = tpu.dynamic_rotate %186 by %c7_i32_11 dim 0 : vector<8x6xf32>, i32 -> vector<8x6xf32>
    %188 = arith.maximumf %186, %187 : vector<8x6xf32>
    %189 = vector.extract_strided_slice %188 {offsets = [0, 0], sizes = [6, 6], strides = [1, 1]} : vector<8x6xf32> to vector<6x6xf32>
    %c0_12 = arith.constant 0 : index
    %c0_13 = arith.constant 0 : index
    %190 = vector.load %arg2[%c0_12, %c0_13] : memref<6x6xf32, #tpu.memory_space<vmem>>, vector<6x6xf32>
    tpu.vector_store %arg2[%c0_12, %c0_13], %189 {strides = array<i32>} : memref<6x6xf32, #tpu.memory_space<vmem>>, vector<6x6xf32>,
    return
  }
}

</mosaic_0001>

<bundles_post_ra>
// kernel: tpu_custom_call.1
= control target key start
LH: loop header
LB: loop body
LE: loop exit
PB: predicated region body
PF: predicated region fallthrough
CT: control target
= control target key end

     0   :  { %7 = vsyncpa [#allocation3], 0  ;;  %s575_s0 = inlined_call_operand.vmem [shape: f32[8,4], index: 0, kind: input, shape index: {}]   ;;  %s576_s1 = inlined_call_operand.hbm [shape: f32[80,128], index: 1, kind: input, shape index: {}]   ;;  %s577_s2 = inlined_call_operand.hbm [shape: f32[6,6], index: 2, kind: output, shape index: {}]  }
   0x1   :  { %8 = vsyncpa [#allocation4], 0  ;;  %s462_s9 = smov [#allocation2]   ;;  %s414_s13 = scalar_lea.hbm %s576_s1, 1280 }
   0x2   :  { %s16_s10 = sshll.u32 %s462_s9, 4  ;;  %p415_p0 = scmp.ne.s32.totalorder %s576_s1, %s414_s13  ;;  %s17_s10 = int_to_ptr.vmem [resolvable:$true] %s16_s10 }
   0x3   :  { %p418_p1 = scmp.lt.u32.totalorder %s414_s13, %s576_s1 }
   0x5   :  { %p420_p2 = pnand %p418_p1, %p415_p0 }
   0x7   :  { %423 = shalt.err (!%p420_p2)
}
   0x8   :  { %s424_s18 = scalar_lea.vmem %s17_s10, 1280  ;;  %p429_p4 = scmp.lt.s32.totalorder %s17_s10, %s17_s10 }
   0x9   :  { %p425_p3 = scmp.ne.s32.totalorder %s17_s10, %s424_s18  ;;  %p430_p5 = scmp.lt.s32.totalorder %s424_s18, %s424_s18 }
   0xb   :  { %p431_p6 = por %p430_p5, %p429_p4 }
   0xd   :  { %p432_p7 = pnand %p431_p6, %p425_p3 }
   0xf   :  { %435 = shalt.err (!%p432_p7)
}
  0x10   :  { %s463_s19 = smov 128   ;;  %s464_s20 = smov 8  }
  0x11   :  { %22 = dma.hbm_to_vmem [thread:$0]  %s576_s1, 1280, %s17_s10, [#allocation3], %s463_s19, %s463_s19, %s464_s20  }
  0x12   :  { %458 = dma.done.wait [#allocation3], 1280  }
  0x13   :  { %459 = vsyncadd [#allocation3], 4294966016  ;;  %v465_v0 = vmov 0   ;;  %v466_v1 = vmov 2   ;;  %v26_v2 = vld [vmem:[%s575_s0] sm:$0xff]  ;;  %v467_v3 = vmov 1   ;;  %v42_v5 = vlaneseq }
  0x14   :  { %386 = vset.pattern.permute.xlu0 %v465_v0  ;;  %388 = vset.pattern.permute.xlu1 %v466_v1  ;;  %v468_v4 = vmov 3   ;;  %v27_v9 = vld [vmem:[#allocation2] sm:$0xf]  ;;  %v360_v20 = vld [vmem:[#allocation2 + $0x8] ss:$0 sm:$0xff]  ;;  %v469_v49 = vmov 5  }
  0x15   :  { %39 = vperm.xlu0 %386, %v26_v2   ;;  %57 = vperm.xlu1 %388, %v26_v2   ;;  %v518_v6 = vshrl.u32 %v42_v5, 7  ;;  %v29_v30 = vld [vmem:[#allocation2 + $0x10] sm:$0xf]  ;;  %v361_v37 = vld [vmem:[#allocation2 + $0x18] ss:$0 sm:$0xff]  ;;  %v470_v50 = vmov 8  }
  0x16   :  { %v471_v51 = vmov 11   ;;  %v472_v52 = vmov 4   ;;  %v473_v53 = vmov 14   ;;  %v474_v54 = vmov 6   ;;  %s483_s0 = smov [#allocation5]  }
  0x17   :  { %v521_v7 = vsub.s32 0, %v518_v6  ;;  %v524_v8 = vsub.s32 2, %v518_v6  ;;  %v527_v10 = vsub.s32 1, %v518_v6  ;;  %v532_v15 = vsub.s32 3, %v518_v6  ;;  %s351_s1 = sshll.u32 %s483_s0, 4  ;;  %s352_s1 = int_to_ptr.vmem [resolvable:$true] %s351_s1 }
  0x18   :  { %v475_v55 = vmov 17   ;;  %v476_v56 = vmov 7   ;;  %v477_v57 = vmov 9   ;;  %v478_v58 = vmov 10   ;;  %s436_s25 = scalar_lea.vmem %s352_s1, 128  ;;  %p441_p9 = scmp.lt.s32.totalorder %s352_s1, %s352_s1 }
  0x19   :  { %387 = vset.pattern.permute.xlu0 %v467_v3  ;;  %389 = vset.pattern.permute.xlu1 %v468_v4  ;;  %v45_v11 = vrot.slane %v27_v9, %v521_v7  ;;  %v63_v13 = vrot.slane %v27_v9, %v524_v8  ;;  %v54_v16 = vrot.slane %v27_v9, %v527_v10  ;;  %v479_v59 = vmov 12   ;;  %p437_p8 = scmp.ne.s32.totalorder %s352_s1, %s436_s25  ;;  %p442_p10 = scmp.lt.s32.totalorder %s436_s25, %s436_s25 }
  0x1a   :  { %48 = vperm.xlu0 %387, %v26_v2   ;;  %66 = vperm.xlu1 %389, %v26_v2   ;;  %v72_v19 = vrot.slane %v27_v9, %v532_v15  ;;  %v91_v31 = vrot.slane %v29_v30, %v521_v7  ;;  %v100_v34 = vrot.slane %v29_v30, %v527_v10  ;;  %v480_v60 = vmov 13  }
  0x1b   :  { %v109_v35 = vrot.slane %v29_v30, %v524_v8  ;;  %v118_v40 = vrot.slane %v29_v30, %v532_v15  ;;  %v481_v61 = vmov 15   ;;  %v482_v62 = vmov 16   ;;  %p443_p11 = por %p442_p10, %p441_p9 }
  0x1c   :  { %vm343_vm0 = vcmask 46080  }
  0x1d   :  { %p444_p12 = pnand %p443_p11, %p437_p8 }
  0x1e   :  { %390 = vset.pattern.permute.xlu1 %v465_v0 }
  0x94   :  { %v40_v12 = vpop.permute.xlu0 %39  ;;  %v58_v14 = vpop.permute.xlu1 %57 }
  0x95   :  { %v46_v17 = vmul.f32 %v45_v11, %v40_v12  ;;  %v64_v18 = vmul.f32 %v63_v13, %v58_v14 }
  0x97   :  { %v78_v24 = vadd.f32 %v360_v20, %v46_v17  ;;  %v32_v20 = vld [vmem:[#allocation2 + $0x28] sm:$0xff] }
  0x99   :  { %v49_v21 = vpop.permute.xlu0 %48  ;;  %v67_v22 = vpop.permute.xlu1 %66 }
  0x9a   :  { %v55_v23 = vmul.f32 %v54_v16, %v49_v21  ;;  %v73_v26 = vmul.f32 %v72_v19, %v67_v22  ;;  %v181_v19 = vsub.s32 5, %v518_v6  ;;  %v172_v21 = vsub.s32 4, %v518_v6 }
  0x9c   :  { %v79_v25 = vadd.f32 %v64_v18, %v55_v23  ;;  %v190_v18 = vsub.s32 6, %v518_v6  ;;  %v31_v23 = vld [vmem:[#allocation2 + $0x20] sm:$0xff] }
  0x9d   :  { %v182_v30 = vrot.slane %v31_v23, %v181_v19 }
  0x9e   :  { %v80_v27 = vadd.f32 %v79_v25, %v78_v24  ;;  %v263_v24 = vrot.slane %v32_v20, %v190_v18 }
  0xa0   :  { %v81_v28 = vadd.f32 %v80_v27, %v73_v26  ;;  %v191_v26 = vrot.slane %v31_v23, %v190_v18  ;;  %v227_v27 = vrot.slane %v32_v20, %v524_v8 }
  0xa2   :  { %v82_v29 = vmax.f32 %v81_v28, 0.0  ;;  %v245_v28 = vrot.slane %v32_v20, %v172_v21 }
  0xa4   :  { %94 = vperm.xlu0 %387, %v82_v29   ;;  %85 = vperm.xlu1 %390, %v82_v29  }
  0xa8   :  { %392 = vset.pattern.permute.xlu0 %v468_v4  ;;  %391 = vset.pattern.permute.xlu1 %v466_v1 }
  0xa9   :  { %112 = vperm.xlu0 %392, %v82_v29   ;;  %103 = vperm.xlu1 %391, %v82_v29   ;;  %v254_v29 = vrot.slane %v32_v20, %v181_v19 }
  0xad   :  { %395 = vset.pattern.permute.xlu0 %v466_v1  ;;  %393 = vset.pattern.permute.xlu1 %v465_v0 }
 0x123   :  { %v86_v32 = vpop.permute.xlu1 %85  ;;  %v95_v33 = vpop.permute.xlu0 %94 }
 0x124   :  { %v92_v36 = vmul.f32 %v91_v31, %v86_v32  ;;  %v101_v39 = vmul.f32 %v100_v34, %v95_v33  ;;  %v146_v31 = vrot.slane %v31_v23, %v527_v10  ;;  %v236_v32 = vrot.slane %v32_v20, %v532_v15 }
 0x125   :  { %v155_v33 = vrot.slane %v31_v23, %v524_v8  ;;  %v173_v34 = vrot.slane %v31_v23, %v172_v21 }
 0x126   :  { %v124_v43 = vadd.f32 %v361_v37, %v92_v36  ;;  %v137_v36 = vrot.slane %v31_v23, %v521_v7  ;;  %v209_v37 = vrot.slane %v32_v20, %v521_v7 }
 0x128   :  { %v104_v38 = vpop.permute.xlu1 %103  ;;  %v113_v42 = vpop.permute.xlu0 %112 }
 0x129   :  { %v110_v41 = vmul.f32 %v109_v35, %v104_v38  ;;  %v119_v45 = vmul.f32 %v118_v40, %v113_v42  ;;  %v164_v38 = vrot.slane %v31_v23, %v532_v15 }
 0x12b   :  { %v125_v44 = vadd.f32 %v110_v41, %v101_v39 }
 0x12d   :  { %v126_v46 = vadd.f32 %v125_v44, %v124_v43 }
 0x12f   :  { %v127_v47 = vadd.f32 %v126_v46, %v119_v45 }
 0x131   :  { %v128_v48 = vmax.f32 %v127_v47, 0.0 }
 0x133   :  { %149 = vperm.xlu0 %395, %v128_v48   ;;  %131 = vperm.xlu1 %393, %v128_v48  }
 0x137   :  { %398 = vset.pattern.permute.xlu0 %v469_v49  ;;  %394 = vset.pattern.permute.xlu1 %v467_v3 }
 0x138   :  { %176 = vperm.xlu0 %398, %v128_v48   ;;  %140 = vperm.xlu1 %394, %v128_v48  }
 0x13c   :  { %401 = vset.pattern.permute.xlu0 %v470_v50  ;;  %396 = vset.pattern.permute.xlu1 %v468_v4 }
 0x13d   :  { %203 = vperm.xlu0 %401, %v128_v48   ;;  %158 = vperm.xlu1 %396, %v128_v48  }
 0x141   :  { %404 = vset.pattern.permute.xlu0 %v471_v51  ;;  %397 = vset.pattern.permute.xlu1 %v472_v52 }
 0x142   :  { %230 = vperm.xlu0 %404, %v128_v48   ;;  %167 = vperm.xlu1 %397, %v128_v48  }
 0x146   :  { %407 = vset.pattern.permute.xlu0 %v473_v53  ;;  %399 = vset.pattern.permute.xlu1 %v474_v54 }
 0x147   :  { %257 = vperm.xlu0 %407, %v128_v48   ;;  %185 = vperm.xlu1 %399, %v128_v48  }
 0x14b   :  { %410 = vset.pattern.permute.xlu0 %v475_v55  ;;  %400 = vset.pattern.permute.xlu1 %v476_v56  ;;  %v33_v56 = vld [vmem:[#allocation2 + $0x30] sm:$0x3] }
 0x14c   :  { %284 = vperm.xlu0 %410, %v128_v48   ;;  %194 = vperm.xlu1 %400, %v128_v48  }
 0x150   :  { %402 = vset.pattern.permute.xlu1 %v477_v57  ;;  %413 = vset.pattern.permute.xlu0 %v467_v3 }
 0x151   :  { %212 = vperm.xlu1 %402, %v128_v48  }
 0x155   :  { %403 = vset.pattern.permute.xlu1 %v478_v58 }
 0x156   :  { %221 = vperm.xlu1 %403, %v128_v48  }
 0x15a   :  { %405 = vset.pattern.permute.xlu1 %v479_v59  ;;  %v362_v59 = vld [vmem:[#allocation2 + $0x38] ss:$0 sm:$0xff] }
 0x15b   :  { %239 = vperm.xlu1 %405, %v128_v48  }
 0x15f   :  { %406 = vset.pattern.permute.xlu1 %v480_v60 }
 0x160   :  { %248 = vperm.xlu1 %406, %v128_v48  }
 0x164   :  { %408 = vset.pattern.permute.xlu1 %v481_v61  ;;  %v281_v61 = vrot.slane %v33_v56, %v521_v7 }
 0x165   :  { %266 = vperm.xlu1 %408, %v128_v48  }
 0x169   :  { %409 = vset.pattern.permute.xlu1 %v482_v62 }
 0x16a   :  { %275 = vperm.xlu1 %409, %v128_v48  }
 0x16e   :  { %411 = vset.pattern.permute.xlu1 %v465_v0  ;;  %v199_v0 = vsub.s32 7, %v518_v6  ;;  %v218_v6 = vrot.slane %v32_v20, %v527_v10 }
 0x170   :  { %v200_v35 = vrot.slane %v31_v23, %v199_v0  ;;  %v272_v60 = vrot.slane %v32_v20, %v199_v0 }
 0x1b2   :  { %v132_v63 = vpop.permute.xlu1 %131  ;;  %v150_v5 = vpop.permute.xlu0 %149 }
 0x1b3   :  { %v156_v51 = vmul.f32 %v155_v33, %v150_v5  ;;  %v138_v52 = vmul.f32 %v137_v36, %v132_v63  ;;  %v290_v5 = vrot.slane %v33_v56, %v527_v10 }
 0x1b7   :  { %v141_v1 = vpop.permute.xlu1 %140  ;;  %v177_v11 = vpop.permute.xlu0 %176 }
 0x1b8   :  { %v183_v45 = vmul.f32 %v182_v30, %v177_v11  ;;  %v147_v46 = vmul.f32 %v146_v31, %v141_v1  ;;  %v296_v11 = vadd.f32 %v362_v59, %v138_v52  ;;  %v363_v31 = vld [vmem:[#allocation2 + $0x48] ss:$0 sm:$0xff] }
 0x1ba   :  { %v297_v62 = vadd.f32 %v156_v51, %v147_v46 }
 0x1bc   :  { %v159_v2 = vpop.permute.xlu1 %158  ;;  %v204_v13 = vpop.permute.xlu0 %203 }
 0x1bd   :  { %v210_v53 = vmul.f32 %v209_v37, %v204_v13  ;;  %v165_v54 = vmul.f32 %v164_v38, %v159_v2 }
 0x1c1   :  { %v168_v4 = vpop.permute.xlu1 %167  ;;  %v231_v17 = vpop.permute.xlu0 %230 }
 0x1c2   :  { %v237_v47 = vmul.f32 %v236_v32, %v231_v17  ;;  %v174_v8 = vmul.f32 %v173_v34, %v168_v4 }
 0x1c4   :  { %v298_v1 = vadd.f32 %v174_v8, %v165_v54 }
 0x1c6   :  { %v186_v9 = vpop.permute.xlu1 %185  ;;  %v258_v25 = vpop.permute.xlu0 %257 }
 0x1c7   :  { %v264_v39 = vmul.f32 %v263_v24, %v258_v25  ;;  %v192_v41 = vmul.f32 %v191_v26, %v186_v9  ;;  %v35_v26 = vld [vmem:[#allocation2 + $0x40] sm:$0x3] }
 0x1c8   :  { %v333_v30 = vrot.slane %v35_v26, %v527_v10 }
 0x1c9   :  { %v299_v55 = vadd.f32 %v192_v41, %v183_v45 }
 0x1cb   :  { %v195_v12 = vpop.permute.xlu1 %194  ;;  %v285_v13 = vpop.permute.xlu0 %284 }
 0x1cc   :  { %v201_v48 = vmul.f32 %v200_v35, %v195_v12  ;;  %v306_v12 = vadd.f32 %v299_v55, %v298_v1  ;;  %v291_v21 = vmul.f32 %v290_v5, %v285_v13 }
 0x1ce   :  { %v300_v9 = vadd.f32 %v210_v53, %v201_v48 }
 0x1d0   :  { %v213_v14 = vpop.permute.xlu1 %212 }
 0x1d1   :  { %v219_v49 = vmul.f32 %v218_v6, %v213_v14  ;;  %v305_v14 = vadd.f32 %v297_v62, %v296_v11 }
 0x1d3   :  { %v310_v19 = vadd.f32 %v306_v12, %v305_v14 }
 0x1d5   :  { %v222_v16 = vpop.permute.xlu1 %221 }
 0x1d6   :  { %v228_v42 = vmul.f32 %v227_v27, %v222_v16  ;;  %v324_v27 = vrot.slane %v35_v26, %v521_v7 }
 0x1d8   :  { %v301_v15 = vadd.f32 %v228_v42, %v219_v49 }
 0x1da   :  { %v240_v22 = vpop.permute.xlu1 %239  ;;  %v307_v63 = vadd.f32 %v301_v15, %v300_v9 }
 0x1db   :  { %v246_v43 = vmul.f32 %v245_v28, %v240_v22 }
 0x1dd   :  { %v302_v57 = vadd.f32 %v246_v43, %v237_v47 }
 0x1df   :  { %v249_v40 = vpop.permute.xlu1 %248 }
 0x1e0   :  { %v255_v44 = vmul.f32 %v254_v29, %v249_v40 }
 0x1e2   :  { %v303_v50 = vadd.f32 %v264_v39, %v255_v44 }
 0x1e4   :  { %v267_v58 = vpop.permute.xlu1 %266  ;;  %v308_v4 = vadd.f32 %v303_v50, %v302_v57 }
 0x1e5   :  { %v273_v17 = vmul.f32 %v272_v60, %v267_v58 }
 0x1e6   :  { %v311_v16 = vadd.f32 %v308_v4, %v307_v63 }
 0x1e8   :  { %v312_v22 = vadd.f32 %v311_v16, %v310_v19 }
 0x1e9   :  { %v276_v2 = vpop.permute.xlu1 %275 }
 0x1ea   :  { %v282_v18 = vmul.f32 %v281_v61, %v276_v2 }
 0x1ec   :  { %v304_v20 = vadd.f32 %v282_v18, %v273_v17 }
 0x1ee   :  { %v309_v0 = vadd.f32 %v304_v20, %v291_v21 }
 0x1f0   :  { %v313_v23 = vadd.f32 %v312_v22, %v309_v0 }
 0x1f2   :  { %v314_v24 = vrot.slane %v313_v23, 1 }
 0x1f4   :  { %v315_v25 = vmax.f32 %v313_v23, %v314_v24 }
 0x1f6   :  { %318 = vperm.xlu1 %411, %v315_v25  }
 0x1fa   :  { %412 = vset.pattern.permute.xlu1 %v467_v3 }
 0x1fb   :  { %327 = vperm.xlu1 %412, %v315_v25  }
 0x275   :  { %v319_v28 = vpop.permute.xlu1 %318 }
 0x276   :  { %v325_v29 = vmul.f32 %v324_v27, %v319_v28 }
 0x278   :  { %v339_v33 = vadd.f32 %v363_v31, %v325_v29 }
 0x27a   :  { %v328_v32 = vpop.permute.xlu1 %327 }
 0x27b   :  { %v334_v34 = vmul.f32 %v333_v30, %v328_v32 }
 0x27d   :  { %v340_v35 = vadd.f32 %v339_v33, %v334_v34 }
 0x27f   :  { %v341_v6 = vrot.slane %v340_v35, 1 }
 0x281   :  { %v342_v36 = vmax.f32 %v340_v35, %v341_v6 }
 0x283   :  { %344 = vst.msk [vmem:[#allocation5] sm:$0x3f] %vm343_vm0, %v342_v36 }
 0x284   :  { %447 = shalt.err (!%p444_p12)
}
 0x285   :  { %s448_s28 = scalar_lea.hbm %s577_s2, 128 }
 0x286   :  { %p449_p13 = scmp.ne.s32.totalorder %s577_s2, %s448_s28  ;;  %p452_p0 = scmp.lt.u32.totalorder %s448_s28, %s577_s2 }
 0x288   :  { %p454_p1 = pnand %p452_p0, %p449_p13 }
 0x28a   :  { %457 = shalt.err (!%p454_p1)
}
 0x28b   :  { %354 = dma.vmem_to_hbm [thread:$0]  %s352_s1, 128, %s577_s2, [#allocation4]  }
 0x28c   :  { %460 = dma.done.wait [#allocation4], 128  }
 0x28d   :  { %461 = vsyncadd [#allocation4], 4294967168 }
 0x28e   :  { %358 = vsyncpa [#allocation3], 1 }
 0x28f   :  { %359 = vsyncpa [#allocation4], 1 }

</bundles_post_ra>
